<compile_context>
chip_gen: v5e
topology: v5e:2x2
jax: 0.10.0
libtpu: 0.0.40
codegen_flags: <defaults>
</compile_context>

<pallas_src>
import functools

import jax
import jax.numpy as jnp
from jax import lax
from jax.experimental import pallas as pl
from jax.experimental.pallas import tpu as pltpu

EPS = 1e-5          # PyTorch BatchNorm1d default eps
OUT_PAD_SUB = 8     # fc3 output features padded 3 -> 8 (sublane dim of [8, B] slab)
MAX_TB = 1024       # batch tile size (rows per grid step)


def _round_up(n, m):
    return ((n + m - 1) // m) * m


def _vmem_limit_bytes():
    phys = 128 * 1024 * 1024
    try:
        phys = int(getattr(pltpu.get_tpu_info(), "vmem_capacity_bytes", phys))
    except Exception:
        pass
    # 48 MiB on 128-MiB VMEM parts (v5e/v6e), 40 MiB on 64-MiB parts (v7x).
    return min(48 * 1024 * 1024, (phys * 5) // 8)


def _masked_sums(maskrow, h):
    """Batch-axis sum and sum-of-squares via a masked ones-row matmul on the
    (otherwise idle) MXU. HIGHEST precision keeps the f32 sums exact enough for
    the one-pass variance."""
    dims = (((1,), (0,)), ((), ()))
    s = lax.dot_general(maskrow, h, dims,
                        precision=lax.Precision.HIGHEST,
                        preferred_element_type=jnp.float32)
    sq = lax.dot_general(maskrow, h * h, dims,
                         precision=lax.Precision.HIGHEST,
                         preferred_element_type=jnp.float32)
    return s, sq


def mlp_bn_kernel(x_ref,                 # [TB, 8]   bf16 (zero-padded rows past b_true)
                  w1_ref, v1_ref,        # [8,128] bf16,  [2,128] f32 (gamma1, beta1)
                  w2_ref, v2_ref,        # [128,64] bf16, [2,64]  f32 (gamma2, beta2)
                  w3t_ref, b3t_ref,      # [8,64] bf16 (rows 3.. zero), [8,1] f32
                  o_ref,                 # [8, TB] f32 transposed output tile
                  bn1_ref, bn2_ref,      # VMEM scratch [4,128]/[4,64]: sum,sumsq,scale,shift
                  *, b_true):
    p = pl.program_id(0)     # phase: 0 = BN1 stats, 1 = BN2 stats, 2 = emit output
    t = pl.program_id(1)     # batch tile
    tb = x_ref.shape[0]
    inv_b = 1.0 / b_true

    # Valid-row mask for this tile (batch is zero-padded up to a tile multiple).
    row = t * tb + lax.broadcasted_iota(jnp.int32, (1, tb), 1)
    maskrow = (row < b_true).astype(jnp.float32)                       # [1, TB]

    @pl.when((p == 0) & (t == 0))
    def _init():
        bn1_ref[...] = jnp.zeros_like(bn1_ref)
        bn2_ref[...] = jnp.zeros_like(bn2_ref)

    @pl.when((p == 1) & (t == 0))
    def _finalize_bn1():
        mean = bn1_ref[0:1, :] * inv_b
        var = jnp.maximum(bn1_ref[1:2, :] * inv_b - mean * mean, 0.0)  # clamp cancellation
        scale = v1_ref[0:1, :] * lax.rsqrt(var + EPS)
        bn1_ref[2:3, :] = scale
        bn1_ref[3:4, :] = v1_ref[1:2, :] - mean * scale

    @pl.when((p == 2) & (t == 0))
    def _finalize_bn2():
        mean = bn2_ref[0:1, :] * inv_b
        var = jnp.maximum(bn2_ref[1:2, :] * inv_b - mean * mean, 0.0)
        scale = v2_ref[0:1, :] * lax.rsqrt(var + EPS)
        bn2_ref[2:3, :] = scale
        bn2_ref[3:4, :] = v2_ref[1:2, :] - mean * scale

    # fc1, no bias: the bias is mathematically cancelled by the BN mean
    # subtraction, so it is dead work (and zero-padded rows stay exactly zero).
    h1 = jnp.dot(x_ref[...], w1_ref[...], preferred_element_type=jnp.float32)   # [TB,128]

    @pl.when(p == 0)
    def _phase0():
        s, sq = _masked_sums(maskrow, h1)
        bn1_ref[0:1, :] += s
        bn1_ref[1:2, :] += sq
        # Keep the (otherwise uninitialized) output block deterministic; phase 2
        # overwrites it with the real values before the final HBM writeback.
        o_ref[...] = jnp.zeros_like(o_ref)

    @pl.when(p >= 1)
    def _phase12():
        # Fused normalize + ReLU + bf16 cast (single VPU pass over h1).
        h1n = jnp.maximum(h1 * bn1_ref[2:3, :] + bn1_ref[3:4, :], 0.0).astype(jnp.bfloat16)
        h2 = jnp.dot(h1n, w2_ref[...], preferred_element_type=jnp.float32)       # [TB,64]

        @pl.when(p == 1)
        def _phase1():
            s, sq = _masked_sums(maskrow, h2)
            bn2_ref[0:1, :] += s
            bn2_ref[1:2, :] += sq
            o_ref[...] = jnp.zeros_like(o_ref)

        @pl.when(p == 2)
        def _phase2():
            h2n = jnp.maximum(h2 * bn2_ref[2:3, :] + bn2_ref[3:4, :], 0.0).astype(jnp.bfloat16)
            # Transposed fc3: [8,64] x [TB,64]^T -> [8,TB]; lane dim = batch, so
            # the store is unmasked and lane-dense with only 32 B/row writeback.
            ot = lax.dot_general(w3t_ref[...], h2n, (((1,), (1,)), ((), ())),
                                 preferred_element_type=jnp.float32)
            o_ref[...] = ot + b3t_ref[...]


def bitcoin_predictor(x, packed_params):
    """x: [B, 8] f32. Returns [B, 3] f32."""
    w1, v1, w2, v2, w3t, b3t = packed_params
    B = x.shape[0]

    if B <= MAX_TB:
        TB = _round_up(max(B, 16), 16)   # multiple of 16 (bf16 sublane tile)
        B_pad = TB
    else:
        TB = MAX_TB
        B_pad = _round_up(B, TB)

    xb = x.astype(jnp.bfloat16)          # halve the x HBM read; kernel needs bf16 anyway
    if B_pad != B:
        xb = jnp.zeros((B_pad, xb.shape[1]), jnp.bfloat16).at[:B, :].set(xb)
    n_tiles = B_pad // TB

    kernel = functools.partial(mlp_bn_kernel, b_true=B)

    out_t = pl.pallas_call(
        kernel,
        out_shape=jax.ShapeDtypeStruct((OUT_PAD_SUB, B_pad), jnp.float32),
        grid=(3, n_tiles),               # (phase, batch tile), phase-major
        in_specs=[
            pl.BlockSpec((TB, 8), lambda p, t: (t, 0)),            # x tile
            pl.BlockSpec((8, 128), lambda p, t: (0, 0)),           # w1
            pl.BlockSpec((2, 128), lambda p, t: (0, 0)),           # gamma1/beta1
            pl.BlockSpec((128, 64), lambda p, t: (0, 0)),          # w2
            pl.BlockSpec((2, 64), lambda p, t: (0, 0)),            # gamma2/beta2
            pl.BlockSpec((OUT_PAD_SUB, 64), lambda p, t: (0, 0)),  # w3 (transposed, padded)
            pl.BlockSpec((OUT_PAD_SUB, 1), lambda p, t: (0, 0)),   # b3 (transposed, padded)
        ],
        out_specs=pl.BlockSpec((OUT_PAD_SUB, TB), lambda p, t: (0, t)),
        scratch_shapes=[
            pltpu.VMEM((4, 128), jnp.float32),   # BN1: sum, sumsq, scale, shift
            pltpu.VMEM((4, 64), jnp.float32),    # BN2: sum, sumsq, scale, shift
        ],
        compiler_params=pltpu.CompilerParams(
            # Both axes sequential: phase ordering and the shared stat scratch
            # require it.  TODO(synk): v7x dual-TensorCore split of the tile axis
            # with per-core partial sums + combine.
            dimension_semantics=("arbitrary", "arbitrary"),
            vmem_limit_bytes=_vmem_limit_bytes(),
        ),
    )(xb, w1, v1, w2, v2, w3t, b3t)

    return out_t[:3, :B].T               # tiny [3,B] slice/transpose in XLA


# ---------------------------------------------------------------------------
# Parameter construction (PyTorch-equivalent init) and packing for the kernel.
# ---------------------------------------------------------------------------
def init_linear(key, fan_in, fan_out):
    # PyTorch nn.Linear default init: U(-1/sqrt(fan_in), 1/sqrt(fan_in)).
    kw, kb = jax.random.split(key)
    bound = 1.0 / (fan_in ** 0.5)
    # weights stored pre-transposed as [in, out] so the kernel does x @ W
    w = jax.random.uniform(kw, (fan_in, fan_out), jnp.float32, -bound, bound)
    b = jax.random.uniform(kb, (1, fan_out), jnp.float32, -bound, bound)
    return w, b


def init_params(key):
    k1, k2, k3 = jax.random.split(key, 3)
    w1, b1 = init_linear(k1, 8, 128)
    w2, b2 = init_linear(k2, 128, 64)
    w3, b3 = init_linear(k3, 64, 3)
    # BatchNorm1d default affine params: gamma = 1, beta = 0
    g1, be1 = jnp.ones((1, 128), jnp.float32), jnp.zeros((1, 128), jnp.float32)
    g2, be2 = jnp.ones((1, 64), jnp.float32), jnp.zeros((1, 64), jnp.float32)
    return (w1, b1, g1, be1, w2, b2, g2, be2, w3, b3)


def pack_params(params):
    """One-time host-side packing: bf16 weights, [2,F] (gamma, beta) packs
    (fc1/fc2 biases are dropped — batch-stat BN cancels them exactly), and a
    transposed, sublane-padded fc3 weight/bias for the lane-dense [8,B] output."""
    (w1, b1, g1, be1, w2, b2, g2, be2, w3, b3) = params
    del b1, b2                                              # dead under batch-stat BN
    v1 = jnp.concatenate([g1, be1], axis=0)                 # [2,128] f32
    v2 = jnp.concatenate([g2, be2], axis=0)                 # [2,64]  f32
    w3t = jnp.zeros((OUT_PAD_SUB, w3.shape[0]), jnp.float32).at[:w3.shape[1], :].set(w3.T)
    b3t = jnp.zeros((OUT_PAD_SUB, 1), jnp.float32).at[:b3.shape[1], :].set(b3.T)
    return (w1.astype(jnp.bfloat16), v1,
            w2.astype(jnp.bfloat16), v2,
            w3t.astype(jnp.bfloat16), b3t)


if __name__ == "__main__":
    key = jax.random.PRNGKey(0)
    kx, kp = jax.random.split(key)

    B = 8
    x = jax.random.normal(kx, (B, 8), jnp.float32)
    params = init_params(kp)
    packed = pack_params(params)

    out = bitcoin_predictor(x, packed)
    jax.block_until_ready(out)
    assert out.shape == (B, 3) and out.dtype == jnp.float32
    assert bool(jnp.all(jnp.isfinite(out)))
    print("KERNEL_OK")
</pallas_src>

<mosaic_0001>
module attributes {stable_mosaic.version = 11 : i64} {
  func.func @mlp_bn_kernel(%arg0: i32, %arg1: i32, %arg2: memref<16x8xbf16, #tpu.memory_space<vmem>>, %arg3: memref<8x128xbf16, #tpu.memory_space<vmem>>, %arg4: memref<2x128xf32, #tpu.memory_space<vmem>>, %arg5: memref<128x64xbf16, #tpu.memory_space<vmem>>, %arg6: memref<2x64xf32, #tpu.memory_space<vmem>>, %arg7: memref<8x64xbf16, #tpu.memory_space<vmem>>, %arg8: memref<8x1xf32, #tpu.memory_space<vmem>>, %arg9: memref<8x16xf32, #tpu.memory_space<vmem>>, %arg10: memref<4x128xf32, #tpu.memory_space<vmem>>, %arg11: memref<4x64xf32, #tpu.memory_space<vmem>>) attributes {dimension_semantics = [#tpu.dimension_semantics<arbitrary>, #tpu.dimension_semantics<arbitrary>], iteration_bounds = array<i64: 3, 1>, scalar_prefetch = 0 : i64, scratch_operands = 2 : i64, tpu.core_type = #tpu.core_type<tc>, window_params = [{transform_indices = @transform_0, window_bounds = array<i64: 16, 8>}, {pipeline_mode = #tpu.pipeline_mode<synchronous>, transform_indices = @transform_1, window_bounds = array<i64: 8, 128>}, {pipeline_mode = #tpu.pipeline_mode<synchronous>, transform_indices = @transform_2, window_bounds = array<i64: 2, 128>}, {pipeline_mode = #tpu.pipeline_mode<synchronous>, transform_indices = @transform_3, window_bounds = array<i64: 128, 64>}, {pipeline_mode = #tpu.pipeline_mode<synchronous>, transform_indices = @transform_4, window_bounds = array<i64: 2, 64>}, {pipeline_mode = #tpu.pipeline_mode<synchronous>, transform_indices = @transform_5, window_bounds = array<i64: 8, 64>}, {pipeline_mode = #tpu.pipeline_mode<synchronous>, transform_indices = @transform_6, window_bounds = array<i64: 8, 1>}, {transform_indices = @transform_7, window_bounds = array<i64: 8, 16>}]} {
    %c16_i32 = arith.constant 16 : i32
    %0 = arith.muli %arg1, %c16_i32 : i32
    %1 = tpu.iota {dimensions = array<i32: 1>} : vector<1x16xi32>
    %2 = vector.broadcast %0 : i32 to vector<1x16xi32>
    %3 = arith.addi %2, %1 : vector<1x16xi32>
    %c8_i32 = arith.constant 8 : i32
    %4 = vector.broadcast %c8_i32 : i32 to vector<1x16xi32>
    %5 = arith.cmpi slt, %3, %4 : vector<1x16xi32>
    %6 = arith.extui %5 : vector<1x16xi1> to vector<1x16xi32>
    %7 = arith.sitofp %6 : vector<1x16xi32> to vector<1x16xf32>
    %c0_i32 = arith.constant 0 : i32
    %8 = arith.cmpi eq, %arg0, %c0_i32 : i32
    %c0_i32_0 = arith.constant 0 : i32
    %9 = arith.cmpi eq, %arg1, %c0_i32_0 : i32
    %10 = arith.andi %8, %9 : i1
    %11 = arith.extui %10 : i1 to i32
    %c0_i32_1 = arith.constant 0 : i32
    %12 = arith.cmpi ne, %11, %c0_i32_1 : i32
    scf.if %12 {
      %cst_13 = arith.constant 0.000000e+00 : f32
      %32 = vector.broadcast %cst_13 : f32 to vector<4x128xf32>
      %c0_14 = arith.constant 0 : index
      %c0_15 = arith.constant 0 : index
      %33 = vector.load %arg10[%c0_14, %c0_15] : memref<4x128xf32, #tpu.memory_space<vmem>>, vector<4x128xf32>
      tpu.vector_store %arg10[%c0_14, %c0_15], %32 {strides = array<i32>} : memref<4x128xf32, #tpu.memory_space<vmem>>, vector<4x128xf32>,
      %cst_16 = arith.constant 0.000000e+00 : f32
      %34 = vector.broadcast %cst_16 : f32 to vector<4x64xf32>
      %c0_17 = arith.constant 0 : index
      %c0_18 = arith.constant 0 : index
      %35 = vector.load %arg11[%c0_17, %c0_18] : memref<4x64xf32, #tpu.memory_space<vmem>>, vector<4x64xf32>
      tpu.vector_store %arg11[%c0_17, %c0_18], %34 {strides = array<i32>} : memref<4x64xf32, #tpu.memory_space<vmem>>, vector<4x64xf32>,
    } else {
    }
    %c1_i32 = arith.constant 1 : i32
    %13 = arith.cmpi eq, %arg0, %c1_i32 : i32
    %c0_i32_2 = arith.constant 0 : i32
    %14 = arith.cmpi eq, %arg1, %c0_i32_2 : i32
    %15 = arith.andi %13, %14 : i1
    %16 = arith.extui %15 : i1 to i32
    %c0_i32_3 = arith.constant 0 : i32
    %17 = arith.cmpi ne, %16, %c0_i32_3 : i32
    scf.if %17 {
      %c0_13 = arith.constant 0 : index
      %c0_14 = arith.constant 0 : index
      %32 = vector.load %arg10[%c0_13, %c0_14] : memref<4x128xf32, #tpu.memory_space<vmem>>, vector<1x128xf32>
      %cst_15 = arith.constant 1.250000e-01 : f32
      %33 = vector.broadcast %cst_15 : f32 to vector<1x128xf32>
      %34 = arith.mulf %32, %33 : vector<1x128xf32>
      %c1 = arith.constant 1 : index
      %c0_16 = arith.constant 0 : index
      %35 = vector.load %arg10[%c1, %c0_16] : memref<4x128xf32, #tpu.memory_space<vmem>>, vector<1x128xf32>
      %cst_17 = arith.constant 1.250000e-01 : f32
      %36 = vector.broadcast %cst_17 : f32 to vector<1x128xf32>
      %37 = arith.mulf %35, %36 : vector<1x128xf32>
      %38 = arith.mulf %34, %34 : vector<1x128xf32>
      %39 = arith.subf %37, %38 : vector<1x128xf32>
      %cst_18 = arith.constant 0.000000e+00 : f32
      %40 = vector.broadcast %cst_18 : f32 to vector<1x128xf32>
      %41 = arith.maximumf %39, %40 : vector<1x128xf32>
      %c0_19 = arith.constant 0 : index
      %c0_20 = arith.constant 0 : index
      %42 = vector.load %arg4[%c0_19, %c0_20] : memref<2x128xf32, #tpu.memory_space<vmem>>, vector<1x128xf32>
      %cst_21 = arith.constant 9.99999974E-6 : f32
      %43 = vector.broadcast %cst_21 : f32 to vector<1x128xf32>
      %44 = arith.addf %41, %43 : vector<1x128xf32>
      %45 = math.rsqrt %44 : vector<1x128xf32>
      %46 = arith.mulf %42, %45 : vector<1x128xf32>
      %c2 = arith.constant 2 : index
      %c0_22 = arith.constant 0 : index
      %47 = vector.load %arg10[%c2, %c0_22] : memref<4x128xf32, #tpu.memory_space<vmem>>, vector<1x128xf32>
      tpu.vector_store %arg10[%c2, %c0_22], %46 {strides = array<i32>} : memref<4x128xf32, #tpu.memory_space<vmem>>, vector<1x128xf32>,
      %c1_23 = arith.constant 1 : index
      %c0_24 = arith.constant 0 : index
      %48 = vector.load %arg4[%c1_23, %c0_24] : memref<2x128xf32, #tpu.memory_space<vmem>>, vector<1x128xf32>
      %49 = arith.mulf %34, %46 : vector<1x128xf32>
      %50 = arith.subf %48, %49 : vector<1x128xf32>
      %c3 = arith.constant 3 : index
      %c0_25 = arith.constant 0 : index
      %51 = vector.load %arg10[%c3, %c0_25] : memref<4x128xf32, #tpu.memory_space<vmem>>, vector<1x128xf32>
      tpu.vector_store %arg10[%c3, %c0_25], %50 {strides = array<i32>} : memref<4x128xf32, #tpu.memory_space<vmem>>, vector<1x128xf32>,
    } else {
    }
    %c2_i32 = arith.constant 2 : i32
    %18 = arith.cmpi eq, %arg0, %c2_i32 : i32
    %c0_i32_4 = arith.constant 0 : i32
    %19 = arith.cmpi eq, %arg1, %c0_i32_4 : i32
    %20 = arith.andi %18, %19 : i1
    %21 = arith.extui %20 : i1 to i32
    %c0_i32_5 = arith.constant 0 : i32
    %22 = arith.cmpi ne, %21, %c0_i32_5 : i32
    scf.if %22 {
      %c0_13 = arith.constant 0 : index
      %c0_14 = arith.constant 0 : index
      %32 = vector.load %arg11[%c0_13, %c0_14] : memref<4x64xf32, #tpu.memory_space<vmem>>, vector<1x64xf32>
      %cst_15 = arith.constant 1.250000e-01 : f32
      %33 = vector.broadcast %cst_15 : f32 to vector<1x64xf32>
      %34 = arith.mulf %32, %33 : vector<1x64xf32>
      %c1 = arith.constant 1 : index
      %c0_16 = arith.constant 0 : index
      %35 = vector.load %arg11[%c1, %c0_16] : memref<4x64xf32, #tpu.memory_space<vmem>>, vector<1x64xf32>
      %cst_17 = arith.constant 1.250000e-01 : f32
      %36 = vector.broadcast %cst_17 : f32 to vector<1x64xf32>
      %37 = arith.mulf %35, %36 : vector<1x64xf32>
      %38 = arith.mulf %34, %34 : vector<1x64xf32>
      %39 = arith.subf %37, %38 : vector<1x64xf32>
      %cst_18 = arith.constant 0.000000e+00 : f32
      %40 = vector.broadcast %cst_18 : f32 to vector<1x64xf32>
      %41 = arith.maximumf %39, %40 : vector<1x64xf32>
      %c0_19 = arith.constant 0 : index
      %c0_20 = arith.constant 0 : index
      %42 = vector.load %arg6[%c0_19, %c0_20] : memref<2x64xf32, #tpu.memory_space<vmem>>, vector<1x64xf32>
      %cst_21 = arith.constant 9.99999974E-6 : f32
      %43 = vector.broadcast %cst_21 : f32 to vector<1x64xf32>
      %44 = arith.addf %41, %43 : vector<1x64xf32>
      %45 = math.rsqrt %44 : vector<1x64xf32>
      %46 = arith.mulf %42, %45 : vector<1x64xf32>
      %c2 = arith.constant 2 : index
      %c0_22 = arith.constant 0 : index
      %47 = vector.load %arg11[%c2, %c0_22] : memref<4x64xf32, #tpu.memory_space<vmem>>, vector<1x64xf32>
      tpu.vector_store %arg11[%c2, %c0_22], %46 {strides = array<i32>} : memref<4x64xf32, #tpu.memory_space<vmem>>, vector<1x64xf32>,
      %c1_23 = arith.constant 1 : index
      %c0_24 = arith.constant 0 : index
      %48 = vector.load %arg6[%c1_23, %c0_24] : memref<2x64xf32, #tpu.memory_space<vmem>>, vector<1x64xf32>
      %49 = arith.mulf %34, %46 : vector<1x64xf32>
      %50 = arith.subf %48, %49 : vector<1x64xf32>
      %c3 = arith.constant 3 : index
      %c0_25 = arith.constant 0 : index
      %51 = vector.load %arg11[%c3, %c0_25] : memref<4x64xf32, #tpu.memory_space<vmem>>, vector<1x64xf32>
      tpu.vector_store %arg11[%c3, %c0_25], %50 {strides = array<i32>} : memref<4x64xf32, #tpu.memory_space<vmem>>, vector<1x64xf32>,
    } else {
    }
    %c0 = arith.constant 0 : index
    %c0_6 = arith.constant 0 : index
    %23 = vector.load %arg2[%c0, %c0_6] : memref<16x8xbf16, #tpu.memory_space<vmem>>, vector<16x8xbf16>
    %c0_7 = arith.constant 0 : index
    %c0_8 = arith.constant 0 : index
    %24 = vector.load %arg3[%c0_7, %c0_8] : memref<8x128xbf16, #tpu.memory_space<vmem>>, vector<8x128xbf16>
    %cst = arith.constant dense<0.000000e+00> : vector<16x128xf32>
    %25 = tpu.matmul %23, %24, %cst {dimension_numbers = #tpu.dot_dimension_numbers<[1], [0], [0], [1], [0, 0, 1, 1], [], []>} : vector<16x8xbf16>, vector<8x128xbf16>, vector<16x128xf32> -> vector<16x128xf32>
    %c0_i32_9 = arith.constant 0 : i32
    %26 = arith.cmpi eq, %arg0, %c0_i32_9 : i32
    %27 = arith.extui %26 : i1 to i32
    %c0_i32_10 = arith.constant 0 : i32
    %28 = arith.cmpi ne, %27, %c0_i32_10 : i32
    scf.if %28 {
      %cst_13 = arith.constant dense<0.000000e+00> : vector<1x128xf32>
      %32 = tpu.matmul %7, %25, %cst_13 {dimension_numbers = #tpu.dot_dimension_numbers<[1], [0], [0], [1], [0, 0, 1, 1], [], []>, precision = #tpu.contract_precision<fp32>} : vector<1x16xf32>, vector<16x128xf32>, vector<1x128xf32> -> vector<1x128xf32>
      %33 = arith.mulf %25, %25 : vector<16x128xf32>
      %cst_14 = arith.constant dense<0.000000e+00> : vector<1x128xf32>
      %34 = tpu.matmul %7, %33, %cst_14 {dimension_numbers = #tpu.dot_dimension_numbers<[1], [0], [0], [1], [0, 0, 1, 1], [], []>, precision = #tpu.contract_precision<fp32>} : vector<1x16xf32>, vector<16x128xf32>, vector<1x128xf32> -> vector<1x128xf32>
      %c0_15 = arith.constant 0 : index
      %c0_16 = arith.constant 0 : index
      %35 = vector.load %arg10[%c0_15, %c0_16] : memref<4x128xf32, #tpu.memory_space<vmem>>, vector<1x128xf32>
      %36 = arith.addf %35, %32 : vector<1x128xf32>
      %c0_17 = arith.constant 0 : index
      %c0_18 = arith.constant 0 : index
      %37 = vector.load %arg10[%c0_17, %c0_18] : memref<4x128xf32, #tpu.memory_space<vmem>>, vector<1x128xf32>
      tpu.vector_store %arg10[%c0_17, %c0_18], %36 {strides = array<i32>} : memref<4x128xf32, #tpu.memory_space<vmem>>, vector<1x128xf32>,
      %c1 = arith.constant 1 : index
      %c0_19 = arith.constant 0 : index
      %38 = vector.load %arg10[%c1, %c0_19] : memref<4x128xf32, #tpu.memory_space<vmem>>, vector<1x128xf32>
      %39 = arith.addf %38, %34 : vector<1x128xf32>
      %c1_20 = arith.constant 1 : index
      %c0_21 = arith.constant 0 : index
      %40 = vector.load %arg10[%c1_20, %c0_21] : memref<4x128xf32, #tpu.memory_space<vmem>>, vector<1x128xf32>
      tpu.vector_store %arg10[%c1_20, %c0_21], %39 {strides = array<i32>} : memref<4x128xf32, #tpu.memory_space<vmem>>, vector<1x128xf32>,
      %cst_22 = arith.constant 0.000000e+00 : f32
      %41 = vector.broadcast %cst_22 : f32 to vector<8x16xf32>
      %c0_23 = arith.constant 0 : index
      %c0_24 = arith.constant 0 : index
      %42 = vector.load %arg9[%c0_23, %c0_24] : memref<8x16xf32, #tpu.memory_space<vmem>>, vector<8x16xf32>
      tpu.vector_store %arg9[%c0_23, %c0_24], %41 {strides = array<i32>} : memref<8x16xf32, #tpu.memory_space<vmem>>, vector<8x16xf32>,
    } else {
    }
    %c1_i32_11 = arith.constant 1 : i32
    %29 = arith.cmpi sge, %arg0, %c1_i32_11 : i32
    %30 = arith.extui %29 : i1 to i32
    %c0_i32_12 = arith.constant 0 : i32
    %31 = arith.cmpi ne, %30, %c0_i32_12 : i32
    scf.if %31 {
      %c2 = arith.constant 2 : index
      %c0_13 = arith.constant 0 : index
      %32 = vector.load %arg10[%c2, %c0_13] : memref<4x128xf32, #tpu.memory_space<vmem>>, vector<1x128xf32>
      %33 = vector.broadcast %32 : vector<1x128xf32> to vector<16x128xf32>
      %34 = arith.mulf %25, %33 : vector<16x128xf32>
      %c3 = arith.constant 3 : index
      %c0_14 = arith.constant 0 : index
      %35 = vector.load %arg10[%c3, %c0_14] : memref<4x128xf32, #tpu.memory_space<vmem>>, vector<1x128xf32>
      %36 = vector.broadcast %35 : vector<1x128xf32> to vector<16x128xf32>
      %37 = arith.addf %34, %36 : vector<16x128xf32>
      %cst_15 = arith.constant 0.000000e+00 : f32
      %38 = vector.broadcast %cst_15 : f32 to vector<16x128xf32>
      %39 = arith.maximumf %37, %38 : vector<16x128xf32>
      %40 = arith.truncf %39 : vector<16x128xf32> to vector<16x128xbf16>
      %c0_16 = arith.constant 0 : index
      %c0_17 = arith.constant 0 : index
      %41 = vector.load %arg5[%c0_16, %c0_17] : memref<128x64xbf16, #tpu.memory_space<vmem>>, vector<128x64xbf16>
      %cst_18 = arith.constant dense<0.000000e+00> : vector<16x64xf32>
      %42 = tpu.matmul %40, %41, %cst_18 {dimension_numbers = #tpu.dot_dimension_numbers<[1], [0], [0], [1], [0, 0, 1, 1], [], []>} : vector<16x128xbf16>, vector<128x64xbf16>, vector<16x64xf32> -> vector<16x64xf32>
      %c1_i32_19 = arith.constant 1 : i32
      %43 = arith.cmpi eq, %arg0, %c1_i32_19 : i32
      %44 = arith.extui %43 : i1 to i32
      %c0_i32_20 = arith.constant 0 : i32
      %45 = arith.cmpi ne, %44, %c0_i32_20 : i32
      scf.if %45 {
        %cst_23 = arith.constant dense<0.000000e+00> : vector<1x64xf32>
        %49 = tpu.matmul %7, %42, %cst_23 {dimension_numbers = #tpu.dot_dimension_numbers<[1], [0], [0], [1], [0, 0, 1, 1], [], []>, precision = #tpu.contract_precision<fp32>} : vector<1x16xf32>, vector<16x64xf32>, vector<1x64xf32> -> vector<1x64xf32>
        %50 = arith.mulf %42, %42 : vector<16x64xf32>
        %cst_24 = arith.constant dense<0.000000e+00> : vector<1x64xf32>
        %51 = tpu.matmul %7, %50, %cst_24 {dimension_numbers = #tpu.dot_dimension_numbers<[1], [0], [0], [1], [0, 0, 1, 1], [], []>, precision = #tpu.contract_precision<fp32>} : vector<1x16xf32>, vector<16x64xf32>, vector<1x64xf32> -> vector<1x64xf32>
        %c0_25 = arith.constant 0 : index
        %c0_26 = arith.constant 0 : index
        %52 = vector.load %arg11[%c0_25, %c0_26] : memref<4x64xf32, #tpu.memory_space<vmem>>, vector<1x64xf32>
        %53 = arith.addf %52, %49 : vector<1x64xf32>
        %c0_27 = arith.constant 0 : index
        %c0_28 = arith.constant 0 : index
        %54 = vector.load %arg11[%c0_27, %c0_28] : memref<4x64xf32, #tpu.memory_space<vmem>>, vector<1x64xf32>
        tpu.vector_store %arg11[%c0_27, %c0_28], %53 {strides = array<i32>} : memref<4x64xf32, #tpu.memory_space<vmem>>, vector<1x64xf32>,
        %c1 = arith.constant 1 : index
        %c0_29 = arith.constant 0 : index
        %55 = vector.load %arg11[%c1, %c0_29] : memref<4x64xf32, #tpu.memory_space<vmem>>, vector<1x64xf32>
        %56 = arith.addf %55, %51 : vector<1x64xf32>
        %c1_30 = arith.constant 1 : index
        %c0_31 = arith.constant 0 : index
        %57 = vector.load %arg11[%c1_30, %c0_31] : memref<4x64xf32, #tpu.memory_space<vmem>>, vector<1x64xf32>
        tpu.vector_store %arg11[%c1_30, %c0_31], %56 {strides = array<i32>} : memref<4x64xf32, #tpu.memory_space<vmem>>, vector<1x64xf32>,
        %cst_32 = arith.constant 0.000000e+00 : f32
        %58 = vector.broadcast %cst_32 : f32 to vector<8x16xf32>
        %c0_33 = arith.constant 0 : index
        %c0_34 = arith.constant 0 : index
        %59 = vector.load %arg9[%c0_33, %c0_34] : memref<8x16xf32, #tpu.memory_space<vmem>>, vector<8x16xf32>
        tpu.vector_store %arg9[%c0_33, %c0_34], %58 {strides = array<i32>} : memref<8x16xf32, #tpu.memory_space<vmem>>, vector<8x16xf32>,
      } else {
      }
      %c2_i32_21 = arith.constant 2 : i32
      %46 = arith.cmpi eq, %arg0, %c2_i32_21 : i32
      %47 = arith.extui %46 : i1 to i32
      %c0_i32_22 = arith.constant 0 : i32
      %48 = arith.cmpi ne, %47, %c0_i32_22 : i32
      scf.if %48 {
        %c2_23 = arith.constant 2 : index
        %c0_24 = arith.constant 0 : index
        %49 = vector.load %arg11[%c2_23, %c0_24] : memref<4x64xf32, #tpu.memory_space<vmem>>, vector<1x64xf32>
        %50 = vector.broadcast %49 : vector<1x64xf32> to vector<16x64xf32>
        %51 = arith.mulf %42, %50 : vector<16x64xf32>
        %c3_25 = arith.constant 3 : index
        %c0_26 = arith.constant 0 : index
        %52 = vector.load %arg11[%c3_25, %c0_26] : memref<4x64xf32, #tpu.memory_space<vmem>>, vector<1x64xf32>
        %53 = vector.broadcast %52 : vector<1x64xf32> to vector<16x64xf32>
        %54 = arith.addf %51, %53 : vector<16x64xf32>
        %cst_27 = arith.constant 0.000000e+00 : f32
        %55 = vector.broadcast %cst_27 : f32 to vector<16x64xf32>
        %56 = arith.maximumf %54, %55 : vector<16x64xf32>
        %57 = arith.truncf %56 : vector<16x64xf32> to vector<16x64xbf16>
        %c0_28 = arith.constant 0 : index
        %c0_29 = arith.constant 0 : index
        %58 = vector.load %arg7[%c0_28, %c0_29] : memref<8x64xbf16, #tpu.memory_space<vmem>>, vector<8x64xbf16>
        %cst_30 = arith.constant dense<0.000000e+00> : vector<8x16xf32>
        %59 = tpu.matmul %58, %57, %cst_30 {dimension_numbers = #tpu.dot_dimension_numbers<[1], [1], [0], [0], [0, 0, 1, 0], [], []>} : vector<8x64xbf16>, vector<16x64xbf16>, vector<8x16xf32> -> vector<8x16xf32>
        %c0_31 = arith.constant 0 : index
        %c0_32 = arith.constant 0 : index
        %60 = vector.load %arg8[%c0_31, %c0_32] : memref<8x1xf32, #tpu.memory_space<vmem>>, vector<8x1xf32>
        %61 = vector.broadcast %60 : vector<8x1xf32> to vector<8x16xf32>
        %62 = arith.addf %59, %61 : vector<8x16xf32>
        %c0_33 = arith.constant 0 : index
        %c0_34 = arith.constant 0 : index
        %63 = vector.load %arg9[%c0_33, %c0_34] : memref<8x16xf32, #tpu.memory_space<vmem>>, vector<8x16xf32>
        tpu.vector_store %arg9[%c0_33, %c0_34], %62 {strides = array<i32>} : memref<8x16xf32, #tpu.memory_space<vmem>>, vector<8x16xf32>,
      } else {
      }
    } else {
    }
    return
  }
  func.func @transform_0(%arg0: i32, %arg1: i32) -> (i32, i32) {
    %c0_i32 = arith.constant 0 : i32
    %c0_i32_0 = arith.constant 0 : i32
    return %arg1, %c0_i32 : i32, i32
  }
  func.func @transform_1(%arg0: i32, %arg1: i32) -> (i32, i32) {
    %c0_i32 = arith.constant 0 : i32
    %c0_i32_0 = arith.constant 0 : i32
    %c0_i32_1 = arith.constant 0 : i32
    return %c0_i32, %c0_i32_0 : i32, i32
  }
  func.func @transform_2(%arg0: i32, %arg1: i32) -> (i32, i32) {
    %c0_i32 = arith.constant 0 : i32
    %c0_i32_0 = arith.constant 0 : i32
    %c0_i32_1 = arith.constant 0 : i32
    return %c0_i32, %c0_i32_0 : i32, i32
  }
  func.func @transform_3(%arg0: i32, %arg1: i32) -> (i32, i32) {
    %c0_i32 = arith.constant 0 : i32
    %c0_i32_0 = arith.constant 0 : i32
    %c0_i32_1 = arith.constant 0 : i32
    return %c0_i32, %c0_i32_0 : i32, i32
  }
  func.func @transform_4(%arg0: i32, %arg1: i32) -> (i32, i32) {
    %c0_i32 = arith.constant 0 : i32
    %c0_i32_0 = arith.constant 0 : i32
    %c0_i32_1 = arith.constant 0 : i32
    return %c0_i32, %c0_i32_0 : i32, i32
  }
  func.func @transform_5(%arg0: i32, %arg1: i32) -> (i32, i32) {
    %c0_i32 = arith.constant 0 : i32
    %c0_i32_0 = arith.constant 0 : i32
    %c0_i32_1 = arith.constant 0 : i32
    return %c0_i32, %c0_i32_0 : i32, i32
  }
  func.func @transform_6(%arg0: i32, %arg1: i32) -> (i32, i32) {
    %c0_i32 = arith.constant 0 : i32
    %c0_i32_0 = arith.constant 0 : i32
    %c0_i32_1 = arith.constant 0 : i32
    return %c0_i32, %c0_i32_0 : i32, i32
  }
  func.func @transform_7(%arg0: i32, %arg1: i32) -> (i32, i32) {
    %c0_i32 = arith.constant 0 : i32
    %c0_i32_0 = arith.constant 0 : i32
    return %c0_i32, %arg1 : i32, i32
  }
}

</mosaic_0001>

<bundles_post_ra>
// kernel: tpu_custom_call.1
= control target key start
LH: loop header
LB: loop body
LE: loop exit
PB: predicated region body
PF: predicated region fallthrough
CT: control target
= control target key end

     0   :  { %12 = vsyncpa [#allocation5], 0  ;;  %s1487_s24 = smov 0   ;;  %s1489_s25 = smov 0   ;;  %s1637_s0 = inlined_call_operand.vmem [shape: bf16[16,8], index: 0, kind: input, shape index: {}]   ;;  %s1638_s1 = inlined_call_operand.vmem [shape: bf16[8,128], index: 1, kind: input, shape index: {}]   ;;  %s1639_s2 = inlined_call_operand.vmem [shape: f32[2,128], index: 2, kind: input, shape index: {}]   ;;  %s1640_s3 = inlined_call_operand.vmem [shape: bf16[128,64], index: 3, kind: input, shape index: {}]   ;;  %s1641_s4 = inlined_call_operand.vmem [shape: f32[2,64], index: 4, kind: input, shape index: {}]   ;;  %s1642_s5 = inlined_call_operand.vmem [shape: bf16[8,64], index: 5, kind: input, shape index: {}]   ;;  %s1643_s6 = inlined_call_operand.vmem [shape: f32[8,1], index: 6, kind: input, shape index: {}]   ;;  %s1644_s7 = inlined_call_operand.hbm [shape: f32[8,16], index: 7, kind: output, shape index: {}]  }
   0x1   :  { %s1491_s26 = smov 0  }
   0x2 LB: > { %s1262_s27 = sadd.s32 4294967295, %s1439_s26   ;;  %s30_s28 = sadd.s32 1, %s1435_s25  ;;  %s1439_s26 = sphi %s1491_s26, %s18_s26   ;;  %s1435_s25 = sphi %s1489_s25, %s1646_s25   ;;  %s1431_s24 = sphi %s1487_s24, %s1645_s24  }
   0x3   : > { %p32_p0 = scmp.ge.s32.totalorder %s30_s28, 3  ;;  %p1265_p1 = scmp.ge.s32.totalorder %s1439_s26, 1 }
   0x4   : > { %p251_p2 = scmp.lt.s32.totalorder %s1439_s26, 4 }
   0x5   : > { %s1648_s28 = smov (%p32_p0, %s30_s28), 0 }
   0x6   : > { %p252_p3 = pnand %p1265_p1, %p251_p2 }
   0x7   : > { %p293_p4 = scmp.eq.s32.totalorder (!%p252_p3), %s1431_s24, 0 }
   0x8   : > { %255 = sbr.rel (%p252_p3) target bundleno = 900 (0x384), region = 48 }
   0xd   : > { %v286_v0 = vlaneseq  ;;  %v1441_v2 = vmov 0.0   ;;  %vm300_vm1 = vcmask (%p293_p4), 519168   ;;  %v1442_v4 = vmov (%p293_p4), 0.0  }
   0xe   : > { %298 = sbr.rel (!%p293_p4) target bundleno = 19 (0x13), region = 52  ;;  %299 = vst [vmem:[#allocation2] sm:$0xf] (%p293_p4), %v1442_v4 }
   0xf   : > { %v287_v1 = vand.u32 127, %v286_v0  ;;  %301 = vst.msk [vmem:[#allocation3] sm:$0xf] (%p293_p4), %vm300_vm1, %v1442_v4 }
  0x11   : > { %vm290_vm0 = vcmp.lt.s32.totalorder %v287_v1, 8 }
  0x12   : > { %v1509_v3 = vsel %vm290_vm0, 1.0, %v1441_v2 }
  0x13 PF: > { %p302_p5 = scmp.eq.s32.totalorder %s1431_s24, 1 }
  0x14   : > { %v314_v18 = vld [vmem:[%s1639_s2] sm:$0x1] (%p302_p5)  ;;  %v328_v22 = vld [vmem:[%s1639_s2 + $0x1] sm:$0x1] (%p302_p5) }
  0x15   : > { %306 = sbr.rel (!%p302_p5) target bundleno = 57 (0x39), region = 56  ;;  %v307_v5 = vld [vmem:[#allocation2] sm:$0x1] (%p302_p5)  ;;  %v309_v6 = vld [vmem:[#allocation2 + $0x1] sm:$0x1] (%p302_p5) }
  0x16   : > { %v308_v7 = vmul.f32 (%p302_p5), 0.125, %v307_v5  ;;  %v310_v8 = vmul.f32 (%p302_p5), 0.125, %v309_v6 }
  0x18   : > { %v311_v9 = vmul.f32 (%p302_p5), %v308_v7, %v308_v7 }
  0x1a   : > { %v312_v10 = vsub.f32 %v310_v8, %v311_v9 }
  0x1c   : > { %v313_v11 = vmax.f32 %v312_v10, 0.0 }
  0x1e   : > { %v315_v12 = vadd.f32 1e-05, %v313_v11 }
  0x20   : > { %1376 = vrsqrt.f32 %v315_v12  ;;  %vm322_vm2 = vweird.f32 %v315_v12 }
  0x26   : > { %v1377_v13 = vpop.eup %1376 }
  0x27   : > { %v317_v14 = vmul.f32 %v1377_v13, %v315_v12  ;;  %vm323_vm3 = vweird.f32 %v1377_v13 }
  0x28   : > { %vm324_vm4 = vmor %vm322_vm2, %vm323_vm3 }
  0x29   : > { %v318_v15 = vmul.f32 %v1377_v13, %v317_v14 }
  0x2b   : > { %v319_v16 = vmul.f32 0.5, %v318_v15 }
  0x2d   : > { %v320_v17 = vsub.f32 1.5, %v319_v16 }
  0x2f   : > { %v321_v19 = vmul.f32 %v1377_v13, %v320_v17 }
  0x31   : > { %v325_v20 = vsel %vm324_vm4, %v1377_v13, %v321_v19 }
  0x32   : > { %v326_v21 = vmul.f32 %v325_v20, %v314_v18 }
  0x34   : > { %327 = vst [vmem:[#allocation2 + $0x2] sm:$0x1] %v326_v21  ;;  %v329_v23 = vmul.f32 %v326_v21, %v308_v7 }
  0x36   : > { %v330_v24 = vsub.f32 %v328_v22, %v329_v23 }
  0x38   : > { %331 = vst [vmem:[#allocation2 + $0x3] sm:$0x1] %v330_v24 }
  0x39 PF: > { %p332_p6 = scmp.eq.s32.totalorder %s1431_s24, 2 }
  0x3a   : > { %v337_v25 = vld [vmem:[#allocation3] sm:$0x1] (%p332_p6)  ;;  %v339_v26 = vld [vmem:[#allocation3 + $0x1] sm:$0x1] (%p332_p6)  ;;  %v344_v38 = vld [vmem:[%s1641_s4] sm:$0x1] (%p332_p6) }
  0x3b   : > { %336 = sbr.rel (!%p332_p6) target bundleno = 94 (0x5e), region = 60  ;;  %v338_v27 = vmul.f32 (%p332_p6), 0.125, %v337_v25  ;;  %v340_v28 = vmul.f32 (%p332_p6), 0.125, %v339_v26  ;;  %vm357_vm8 = vcmask (%p332_p6), 516096   ;;  %v359_v42 = vld [vmem:[%s1641_s4 + $0x1] sm:$0x1] (%p332_p6) }
  0x3d   : > { %v341_v29 = vmul.f32 (%p332_p6), %v338_v27, %v338_v27 }
  0x3f   : > { %v342_v30 = vsub.f32 (%p332_p6), %v340_v28, %v341_v29 }
  0x41   : > { %v343_v31 = vmax.f32 %v342_v30, 0.0 }
  0x43   : > { %v345_v32 = vadd.f32 1e-05, %v343_v31 }
  0x45   : > { %1378 = vrsqrt.f32 %v345_v32  ;;  %vm352_vm5 = vweird.f32 %v345_v32 }
  0x4b   : > { %v1379_v33 = vpop.eup %1378 }
  0x4c   : > { %v347_v34 = vmul.f32 %v1379_v33, %v345_v32  ;;  %vm353_vm6 = vweird.f32 %v1379_v33 }
  0x4d   : > { %vm354_vm7 = vmor %vm352_vm5, %vm353_vm6 }
  0x4e   : > { %v348_v35 = vmul.f32 %v1379_v33, %v347_v34 }
  0x50   : > { %v349_v36 = vmul.f32 0.5, %v348_v35 }
  0x52   : > { %v350_v37 = vsub.f32 1.5, %v349_v36 }
  0x54   : > { %v351_v39 = vmul.f32 %v1379_v33, %v350_v37 }
  0x56   : > { %v355_v40 = vsel %vm354_vm7, %v1379_v33, %v351_v39 }
  0x57   : > { %v356_v41 = vmul.f32 %v355_v40, %v344_v38 }
  0x59   : > { %358 = vst.msk [vmem:[#allocation3 + $0x2] sm:$0x1] %vm357_vm8, %v356_v41  ;;  %v360_v43 = vmul.f32 %v356_v41, %v338_v27 }
  0x5b   : > { %v361_v44 = vsub.f32 %v359_v42, %v360_v43 }
  0x5d   : > { %362 = vst.msk [vmem:[#allocation3 + $0x3] sm:$0x1] %vm357_vm8, %v361_v44 }
  0x5e PF: > { %v365_v45 = vld [vmem:[%s1638_s1] sm:$0xf]  ;;  %vm375_vm9 = vcmask 1043456   ;;  %vm371_vm10 = vcmask 64512   ;;  %p1275_p7 = scmp.ne.s32.totalorder %s1431_s24, 0 }
  0x5f   : > { %v377_v46 = vsel %vm375_vm9, %v365_v45, 0  ;;  %v1331_v47 = vld [vmem:[%s1637_s0] sm:$0xff] }
  0x60   : > { %386 = vmatpush.bf16.msra.mxu0 %v377_v46 }
  0x63   : > { %1274 = vmatmul.msk.bf16.vlgmr.msra.gmra.mxu0 %vm371_vm10, %v1331_v47 }
  0xe0   : > { %v1531_v48 = vpop.f32.mrf.mxu0 }
  0xe4   : > { %395 = sbr.rel (%p1275_p7) target bundleno = 398 (0x18e), region = 64 }
  0xe8   : > { %v1533_v49 = vpop.f32.mrf.mxu0 }
  0xe9   : > { %v414_v50 = vand.u32 4294901760, %v1533_v49  ;;  %v416_v51 = vand.u32 4294901760, %v1531_v48  ;;  %vm396_vm11 = vcmask 130048   ;;  %v1443_v53 = vmov 0.0   ;;  %v720_v25 = vld [vmem:[#allocation2] sm:$0x1] }
  0xea   : > { %v398_v52 = vsel %vm396_vm11, %v1509_v3, 0  ;;  %726 = vst.msk [vmem:[#allocation4] sm:$0xff] %vm396_vm11, %v1443_v53  ;;  %v560_v54 = vmul.f32 %v1533_v49, %v1533_v49  ;;  %v559_v55 = vmul.f32 %v1531_v48, %v1531_v48  ;;  %v723_v38 = vld [vmem:[#allocation2 + $0x1] sm:$0x1] }
  0xeb   : > { %v442_v56 = vsub.f32 %v1533_v49, %v414_v50  ;;  %415 = vmatpush.msra.mxu0 %v414_v50  ;;  %499 = vmatpush.msra.mxu3 %v414_v50  ;;  %v448_v57 = vsub.f32 %v1531_v48, %v416_v51  ;;  %v419_v58 = vsub.f32 %v398_v52, %v398_v52 }
  0xec   : > { %v575_v59 = vand.u32 4294901760, %v560_v54  ;;  %v577_v60 = vand.u32 4294901760, %v559_v55 }
  0xed   : > { %474 = vmatpush.msra.mxu2 %v442_v56  ;;  %417 = vmatpush.msra.mxu0 %v416_v51  ;;  %v420_v61 = vand.u32 4294901760, %v419_v58  ;;  %v443_v62 = vand.u32 4294901760, %v442_v56  ;;  %v449_v63 = vand.u32 4294901760, %v448_v57 }
  0xee   : > { %501 = vmatpush.msra.mxu3 %v416_v51  ;;  %v603_v0 = vsub.f32 %v560_v54, %v575_v59  ;;  %v609_v1 = vsub.f32 %v559_v55, %v577_v60 }
  0xef   : > { %477 = vmatpush.msra.mxu2 %v448_v57  ;;  %v421_v2 = vsub.f32 %v419_v58, %v420_v61  ;;  %v444_v4 = vsub.f32 %v442_v56, %v443_v62  ;;  %505 = vmatmul.f32.vlgmr.msra.gmra.mxu3 %v420_v61  ;;  %v450_v5 = vsub.f32 %v448_v57, %v449_v63 }
  0xf0   : > { %480 = vmatmul.f32.vlgmr.msra.gmra.mxu2 %v419_v58  ;;  %526 = vmatpush.msrb.mxu0 %v443_v62  ;;  %v604_v6 = vand.u32 4294901760, %v603_v0  ;;  %v610_v7 = vand.u32 4294901760, %v609_v1 }
  0xf1   : > { %v422_v8 = vand.u32 4294901760, %v421_v2  ;;  %v445_v9 = vand.u32 4294901760, %v444_v4  ;;  %576 = vmatpush.msrb.mxu2 %v575_v59  ;;  %v451_v10 = vand.u32 4294901760, %v450_v5 }
  0xf2   : > { %v605_v11 = vsub.f32 %v603_v0, %v604_v6  ;;  %530 = vmatpush.msrb.mxu0 %v449_v63  ;;  %v611_v12 = vsub.f32 %v609_v1, %v610_v7 }
  0xf3   : > { %423 = vmatmul.f32.vlgmr.msra.gmra.mxu0 %v422_v8  ;;  %446 = vmatpush.msra.mxu1 %v445_v9 }
  0xf4   : > { %v606_v13 = vand.u32 4294901760, %v605_v11  ;;  %578 = vmatpush.msrb.mxu2 %v577_v60  ;;  %v612_v14 = vand.u32 4294901760, %v611_v12  ;;  %635 = vmatpush.msra.mxu0 %v603_v0 }
  0xf5   : > { %452 = vmatpush.msra.mxu1 %v451_v10 }
  0xf6   : > { %687 = vmatpush.msra.mxu2 %v604_v6  ;;  %607 = vmatpush.msrb.mxu3 %v606_v13 }
  0xf7   : > { %1276 = vmatmul.msk.f32.vlgmr.msra.gmra.mxu1 %vm396_vm11, %v1509_v3  ;;  %638 = vmatpush.msra.mxu0 %v609_v1 }
  0xf8   : > { %551 = vmatpush.msrb.mxu1 %v414_v50  ;;  %691 = vmatpush.msra.mxu2 %v610_v7 }
  0xf9   : > { %613 = vmatpush.msrb.mxu3 %v612_v14  ;;  %584 = vmatmul.f32.vlgmr.msrb.gmra.mxu2 %v422_v8 }
  0xfa   : > { %553 = vmatpush.msrb.mxu1 %v416_v51  ;;  %1279 = vmatmul.msk.f32.vlgmr.msrb.gmra.mxu3 %vm396_vm11, %v1509_v3 }
  0xfb   : > { %712 = vmatpush.msra.mxu3 %v575_v59  ;;  %1277 = vmatmul.msk.f32.vlgmr.msrb.gmra.mxu0 %vm396_vm11, %v1509_v3 }
  0xfc   : > { %660 = vmatpush.msra.mxu1 %v575_v59 }
  0xfd   : > { %714 = vmatpush.msra.mxu3 %v577_v60 }
  0xfe   : > { %662 = vmatpush.msra.mxu1 %v577_v60 }
  0xff   : > { %1278 = vmatmul.msk.f32.vlgmr.msrb.gmra.mxu1 %vm396_vm11, %v1509_v3 }
 0x101   : > { %1280 = vmatmul.msk.f32.vlgmr.msra.gmra.mxu2 %vm396_vm11, %v1509_v3 }
 0x102   : > { %1281 = vmatmul.msk.f32.vlgmr.msra.gmra.mxu3 %vm396_vm11, %v1509_v3 }
 0x103   : > { %641 = vmatmul.f32.vlgmr.msra.gmra.mxu0 %v419_v58 }
 0x107   : > { %666 = vmatmul.f32.vlgmr.msra.gmra.mxu1 %v420_v61 }
 0x170   : > { %v424_v15 = vpop.f32.mrf.mxu0 }
 0x172   : > { %v506_v16 = vpop.f32.mrf.mxu3 }
 0x173   : > { %v481_v18 = vpop.f32.mrf.mxu2 }
 0x174   : > { %v455_v17 = vpop.f32.mrf.mxu1 }
 0x175   : > { %v456_v19 = vadd.f32 %v455_v17, %v424_v15 }
 0x177   : > { %v482_v20 = vadd.f32 %v481_v18, %v456_v19 }
 0x178   : > { %v533_v22 = vpop.f32.mrf.mxu0 }
 0x179   : > { %v507_v21 = vadd.f32 %v506_v16, %v482_v20 }
 0x17b   : > { %v534_v23 = vadd.f32 %v533_v22, %v507_v21 }
 0x17c   : > { %v556_v24 = vpop.f32.mrf.mxu1  ;;  %v585_v26 = vpop.f32.mrf.mxu2 }
 0x17d   : > { %v557_v27 = vadd.f32 %v556_v24, %v534_v23  ;;  %v616_v28 = vpop.f32.mrf.mxu3 }
 0x17e   : > { %v617_v29 = vadd.f32 %v616_v28, %v585_v26 }
 0x17f   : > { %v721_v30 = vadd.f32 %v720_v25, %v557_v27 }
 0x180   : > { %v642_v31 = vpop.f32.mrf.mxu0 }
 0x181   : > { %722 = vst [vmem:[#allocation2] sm:$0x1] %v721_v30  ;;  %v643_v32 = vadd.f32 %v642_v31, %v617_v29 }
 0x184   : > { %v667_v33 = vpop.f32.mrf.mxu1  ;;  %v694_v34 = vpop.f32.mrf.mxu2 }
 0x185   : > { %v668_v35 = vadd.f32 %v667_v33, %v643_v32  ;;  %v717_v36 = vpop.f32.mrf.mxu3 }
 0x187   : > { %v695_v37 = vadd.f32 %v694_v34, %v668_v35 }
 0x189   : > { %v718_v39 = vadd.f32 %v717_v36, %v695_v37 }
 0x18b   : > { %v724_v40 = vadd.f32 %v723_v38, %v718_v39 }
 0x18d   : > { %725 = vst [vmem:[#allocation2 + $0x1] sm:$0x1] %v724_v40 }
 0x18e PF: > { %p1282_p8 = scmp.lt.s32.totalorder %s1431_s24, 1 }
 0x18f   : > { %p1315_p9 = scmp.ne.s32.totalorder (!%p1282_p8), %s1431_s24, 1 }
 0x190   : > { %730 = sbr.rel (%p1282_p8) target bundleno = 894 (0x37e), region = 68 }
 0x195   : > { %v1339_v41 = vld [vmem:[%s1640_s3 + $0x38] sm:$0xff]  ;;  %v1338_v42 = vld [vmem:[%s1640_s3 + $0x30] sm:$0xff]  ;;  %v1337_v43 = vld [vmem:[%s1640_s3 + $0x28] sm:$0xff] }
 0x196   : > { %806 = vmatpush.bf16.msra.mxu0 %v1339_v41  ;;  %v1336_v44 = vld [vmem:[%s1640_s3 + $0x20] sm:$0xff]  ;;  %v1335_v46 = vld [vmem:[%s1640_s3 + $0x18] sm:$0xff]  ;;  %v1334_v52 = vld [vmem:[%s1640_s3 + $0x10] sm:$0xff] }
 0x197   : > { %v1380_v45 = vld [vmem:[#allocation2 + $0x2] ss:$0 sm:$0xff]  ;;  %v1381_v51 = vld [vmem:[#allocation2 + $0x3] ss:$0 sm:$0xff]  ;;  %v1333_v55 = vld [vmem:[%s1640_s3 + $0x8] sm:$0xff] }
 0x198   : > { %v733_v47 = vmul.f32 %v1380_v45, %v1531_v48  ;;  %v734_v50 = vmul.f32 %v1380_v45, %v1533_v49  ;;  %v1332_v48 = vld [vmem:[%s1640_s3] sm:$0xff] }
 0x19a   : > { %807 = vmatpush.bf16.msra.mxu0 %v1338_v42  ;;  %v737_v53 = vadd.f32 %v1381_v51, %v733_v47  ;;  %v738_v54 = vadd.f32 %v1381_v51, %v734_v50 }
 0x19c   : > { %v739_v56 = vmax.f32 %v737_v53, 0.0  ;;  %v740_v57 = vmax.f32 %v738_v54, 0.0 }
 0x19e   : > { %808 = vmatpush.bf16.msra.mxu0 %v1337_v43  ;;  %v741_v49 = vpack.c.bf16 %v740_v57, %v739_v56 }
 0x1a2   : > { %809 = vmatpush.bf16.msra.mxu0 %v1336_v44 }
 0x1a6   : > { %810 = vmatpush.bf16.msra.mxu0 %v1335_v46 }
 0x1aa   : > { %811 = vmatpush.bf16.msra.mxu0 %v1334_v52 }
 0x1ae   : > { %812 = vmatpush.bf16.msra.mxu0 %v1333_v55 }
 0x1b2   : > { %813 = vmatpush.bf16.msra.mxu0 %v1332_v48 }
 0x1b5   : > { %814 = vmatmul.bf16.vlgmr.msra.gmra.mxu0 %v741_v49 }
 0x232   : > { %v1586_v58 = vpop.f32.mrf.mxu0 }
 0x236   : > { %822 = sbr.rel (%p1315_p9) target bundleno = 736 (0x2e0), region = 72 }
 0x23a   : > { %v1588_v59 = vpop.f32.mrf.mxu0 }
 0x23b   : > { %v841_v60 = vand.u32 4294901760, %v1588_v59  ;;  %v843_v61 = vand.u32 4294901760, %v1586_v58  ;;  %vm823_vm12 = vcmask 130048   ;;  %v1444_v63 = vmov 0.0   ;;  %v1147_v35 = vld [vmem:[#allocation3] sm:$0x1] }
 0x23c   : > { %v825_v62 = vsel %vm823_vm12, %v1509_v3, 0  ;;  %1154 = vst.msk [vmem:[#allocation4] sm:$0xff] %vm823_vm12, %v1444_v63  ;;  %v987_v0 = vmul.f32 %v1588_v59, %v1588_v59  ;;  %v986_v1 = vmul.f32 %v1586_v58, %v1586_v58  ;;  %vm1149_vm13 = vcmask 516096   ;;  %v1151_v47 = vld [vmem:[#allocation3 + $0x1] sm:$0x1] }
 0x23d   : > { %v869_v2 = vsub.f32 %v1588_v59, %v841_v60  ;;  %842 = vmatpush.msra.mxu0 %v841_v60  ;;  %926 = vmatpush.msra.mxu3 %v841_v60  ;;  %v875_v4 = vsub.f32 %v1586_v58, %v843_v61  ;;  %v846_v5 = vsub.f32 %v825_v62, %v825_v62 }
 0x23e   : > { %v1002_v6 = vand.u32 4294901760, %v987_v0  ;;  %v1004_v7 = vand.u32 4294901760, %v986_v1 }
 0x23f   : > { %901 = vmatpush.msra.mxu2 %v869_v2  ;;  %844 = vmatpush.msra.mxu0 %v843_v61  ;;  %v847_v8 = vand.u32 4294901760, %v846_v5  ;;  %v870_v9 = vand.u32 4294901760, %v869_v2  ;;  %v876_v10 = vand.u32 4294901760, %v875_v4 }
 0x240   : > { %928 = vmatpush.msra.mxu3 %v843_v61  ;;  %v1030_v11 = vsub.f32 %v987_v0, %v1002_v6  ;;  %v1036_v12 = vsub.f32 %v986_v1, %v1004_v7 }
 0x241   : > { %904 = vmatpush.msra.mxu2 %v875_v4  ;;  %v848_v13 = vsub.f32 %v846_v5, %v847_v8  ;;  %v871_v14 = vsub.f32 %v869_v2, %v870_v9  ;;  %932 = vmatmul.f32.vlgmr.msra.gmra.mxu3 %v847_v8  ;;  %v877_v15 = vsub.f32 %v875_v4, %v876_v10 }
 0x242   : > { %907 = vmatmul.f32.vlgmr.msra.gmra.mxu2 %v846_v5  ;;  %953 = vmatpush.msrb.mxu0 %v870_v9  ;;  %v1031_v16 = vand.u32 4294901760, %v1030_v11  ;;  %v1037_v17 = vand.u32 4294901760, %v1036_v12 }
 0x243   : > { %v849_v18 = vand.u32 4294901760, %v848_v13  ;;  %v872_v19 = vand.u32 4294901760, %v871_v14  ;;  %1003 = vmatpush.msrb.mxu2 %v1002_v6  ;;  %v878_v20 = vand.u32 4294901760, %v877_v15 }
 0x244   : > { %v1032_v21 = vsub.f32 %v1030_v11, %v1031_v16  ;;  %957 = vmatpush.msrb.mxu0 %v876_v10  ;;  %v1038_v22 = vsub.f32 %v1036_v12, %v1037_v17 }
 0x245   : > { %850 = vmatmul.f32.vlgmr.msra.gmra.mxu0 %v849_v18  ;;  %873 = vmatpush.msra.mxu1 %v872_v19 }
 0x246   : > { %v1033_v23 = vand.u32 4294901760, %v1032_v21  ;;  %1005 = vmatpush.msrb.mxu2 %v1004_v7  ;;  %v1039_v24 = vand.u32 4294901760, %v1038_v22  ;;  %1062 = vmatpush.msra.mxu0 %v1030_v11 }
 0x247   : > { %879 = vmatpush.msra.mxu1 %v878_v20 }
 0x248   : > { %1114 = vmatpush.msra.mxu2 %v1031_v16  ;;  %1034 = vmatpush.msrb.mxu3 %v1033_v23 }
 0x249   : > { %1316 = vmatmul.msk.f32.vlgmr.msra.gmra.mxu1 %vm823_vm12, %v1509_v3  ;;  %1065 = vmatpush.msra.mxu0 %v1036_v12 }
 0x24a   : > { %978 = vmatpush.msrb.mxu1 %v841_v60  ;;  %1118 = vmatpush.msra.mxu2 %v1037_v17 }
 0x24b   : > { %1040 = vmatpush.msrb.mxu3 %v1039_v24  ;;  %1011 = vmatmul.f32.vlgmr.msrb.gmra.mxu2 %v849_v18 }
 0x24c   : > { %980 = vmatpush.msrb.mxu1 %v843_v61  ;;  %1319 = vmatmul.msk.f32.vlgmr.msrb.gmra.mxu3 %vm823_vm12, %v1509_v3 }
 0x24d   : > { %1139 = vmatpush.msra.mxu3 %v1002_v6  ;;  %1317 = vmatmul.msk.f32.vlgmr.msrb.gmra.mxu0 %vm823_vm12, %v1509_v3 }
 0x24e   : > { %1087 = vmatpush.msra.mxu1 %v1002_v6 }
 0x24f   : > { %1141 = vmatpush.msra.mxu3 %v1004_v7 }
 0x250   : > { %1089 = vmatpush.msra.mxu1 %v1004_v7 }
 0x251   : > { %1318 = vmatmul.msk.f32.vlgmr.msrb.gmra.mxu1 %vm823_vm12, %v1509_v3 }
 0x253   : > { %1320 = vmatmul.msk.f32.vlgmr.msra.gmra.mxu2 %vm823_vm12, %v1509_v3 }
 0x254   : > { %1321 = vmatmul.msk.f32.vlgmr.msra.gmra.mxu3 %vm823_vm12, %v1509_v3 }
 0x255   : > { %1068 = vmatmul.f32.vlgmr.msra.gmra.mxu0 %v846_v5 }
 0x259   : > { %1093 = vmatmul.f32.vlgmr.msra.gmra.mxu1 %v847_v8 }
 0x2c2   : > { %v851_v25 = vpop.f32.mrf.mxu0 }
 0x2c4   : > { %v933_v26 = vpop.f32.mrf.mxu3 }
 0x2c5   : > { %v908_v28 = vpop.f32.mrf.mxu2 }
 0x2c6   : > { %v882_v27 = vpop.f32.mrf.mxu1 }
 0x2c7   : > { %v883_v29 = vadd.f32 %v882_v27, %v851_v25 }
 0x2c9   : > { %v909_v30 = vadd.f32 %v908_v28, %v883_v29 }
 0x2ca   : > { %v960_v32 = vpop.f32.mrf.mxu0 }
 0x2cb   : > { %v934_v31 = vadd.f32 %v933_v26, %v909_v30 }
 0x2cd   : > { %v961_v33 = vadd.f32 %v960_v32, %v934_v31 }
 0x2ce   : > { %v983_v34 = vpop.f32.mrf.mxu1  ;;  %v1012_v36 = vpop.f32.mrf.mxu2 }
 0x2cf   : > { %v984_v37 = vadd.f32 %v983_v34, %v961_v33  ;;  %v1043_v38 = vpop.f32.mrf.mxu3 }
 0x2d0   : > { %v1044_v39 = vadd.f32 %v1043_v38, %v1012_v36 }
 0x2d1   : > { %v1148_v40 = vadd.f32 %v1147_v35, %v984_v37 }
 0x2d2   : > { %v1069_v3 = vpop.f32.mrf.mxu0 }
 0x2d3   : > { %1150 = vst.msk [vmem:[#allocation3] sm:$0x1] %vm1149_vm13, %v1148_v40  ;;  %v1070_v41 = vadd.f32 %v1069_v3, %v1044_v39 }
 0x2d6   : > { %v1094_v42 = vpop.f32.mrf.mxu1  ;;  %v1121_v43 = vpop.f32.mrf.mxu2 }
 0x2d7   : > { %v1095_v44 = vadd.f32 %v1094_v42, %v1070_v41  ;;  %v1144_v45 = vpop.f32.mrf.mxu3 }
 0x2d9   : > { %v1122_v46 = vadd.f32 %v1121_v43, %v1095_v44 }
 0x2db   : > { %v1145_v50 = vadd.f32 %v1144_v45, %v1122_v46 }
 0x2dd   : > { %v1152_v51 = vadd.f32 %v1151_v47, %v1145_v50 }
 0x2df   : > { %1153 = vst.msk [vmem:[#allocation3 + $0x1] sm:$0x1] %vm1149_vm13, %v1152_v51 }
 0x2e0 PF: > { %p1322_p10 = scmp.ne.s32.totalorder %s1431_s24, 2 }
 0x2e2   : > { %1157 = sbr.rel (%p1322_p10) target bundleno = 894 (0x37e), region = 76 }
 0x2e7   : > { %v1383_v52 = vld [vmem:[#allocation3 + $0x2] ss:$0 sm:$0xff]  ;;  %v1384_v53 = vld [vmem:[#allocation3 + $0x3] ss:$0 sm:$0xff]  ;;  %v1445_v56 = vmov 0   ;;  %vm1176_vm14 = vcmask 523264  }
 0x2e8   : > { %v1160_v54 = vmul.f32 %v1383_v52, %v1586_v58  ;;  %v1161_v55 = vmul.f32 %v1383_v52, %v1588_v59  ;;  %1382 = vset.pattern.permute.xlu0 %v1445_v56  ;;  %v1170_v57 = vld [vmem:[%s1643_s6] sm:$0xff]  ;;  %vm1196_vm15 = vcmask 130048  }
 0x2e9   : > { %1173 = vperm.xlu0 %1382, %v1170_v57   ;;  %v1169_v58 = vld [vmem:[%s1642_s5] sm:$0xf] }
 0x2ea   : > { %v1164_v48 = vadd.f32 %v1384_v53, %v1160_v54  ;;  %v1165_v49 = vadd.f32 %v1384_v53, %v1161_v55 }
 0x2ec   : > { %v1166_v60 = vmax.f32 %v1164_v48, 0.0  ;;  %v1167_v61 = vmax.f32 %v1165_v49, 0.0 }
 0x2ee   : > { %v1168_v62 = vpack.c.bf16 %v1167_v61, %v1166_v60 }
 0x2f0   : > { %v1181_v63 = vsel %vm1176_vm14, %v1168_v62, 0 }
 0x2f1   : > { %1190 = vmatpush.bf16.xpose.msra.mxu0 %v1181_v63 }
 0x2f8   : > { %1323 = vmatmul.msk.bf16.vlgmr.msra.gmra.mxu0 %vm1176_vm14, %v1169_v58 }
 0x35b   : > { %v1174_v59 = vpop.permute.xlu0 %1173 }
 0x375   : > { %v1192_v0 = vpop.f32.mrf.mxu0 }
 0x376   : > { %v1193_v1 = vadd.f32 %v1192_v0, %v1174_v59 }
 0x378   : > { %1197 = vst.msk [vmem:[#allocation4] sm:$0xff] %vm1196_vm15, %v1193_v1 }
 0x37d   : > { %v1194_v2 = vpop.f32.mrf.mxu0 }
 0x37e PF: > { %p1344_p11 = scmp.eq.s32.totalorder %s1262_s27, 2  ;;  %s1208_s21 = sshll.u32 %s1644_s7, 4  ;;  %s1209_s21 = int_to_ptr.hbm [resolvable:$true] %s1208_s21 }
 0x37f   : > { %s1446_s22 = smov [#allocation4]  }
 0x380   : > { %s1206_s23 = sshll.u32 %s1446_s22, 4  ;;  %s1207_s23 = int_to_ptr.vmem [resolvable:$true] %s1206_s23 }
 0x381   : > { %1341 = dma.vmem_to_hbm [thread:$0]  (%p1344_p11), %s1207_s23, 128, %s1209_s21, [#allocation5]  }
 0x382   : > { %1426 = dma.done.wait (%p1344_p11), [#allocation5], 128  }
 0x383   : > { %1428 = vsyncadd (%p1344_p11), [#allocation5], 4294967168 }
 0x384 PF: > { %s18_s26 = sadd.s32 1, %s1439_s26   ;;  %s1645_s24 = smov %s1435_s25 }
 0x385   : > { %p15_p12 = scmp.ge.s32.totalorder %s18_s26, 5   ;;  %s1646_s25 = smov %s1648_s28 }
 0x387   :  { %17 = sbr.rel (!%p15_p12) target bundleno = 2 (0x2), region = 104 }
 0x38c   :  { %1222 = vsyncpa [#allocation5], 1 }
 0x38d   :  { %1224 = vsyncpa [#allocation5 + $0x1], 1 }

</bundles_post_ra>
